<compile_context>
chip_gen: v7x
topology: tpu7x:2x2x1
jax: 0.10.0
libtpu: 0.0.40
codegen_flags: <defaults>
</compile_context>

<pallas_src>
import functools

import jax
import jax.numpy as jnp
from jax.experimental import pallas as pl
from jax.experimental.pallas import tpu as pltpu


def pam_kernel(x_ref, xp_ref, k_ref, wqt_ref, bq_ref, gamma_ref, o_ref, *,
               matmul_dtype, approx_recip):
    """One (batch, query-tile) grid step; channels-major layout.

    x_ref     : (1, C, TQ) fp32   query / residual tile
    xp_ref    : (1, C, Np) mm     pooled features, channels-major (value)
    k_ref     : (1, Np, KP) mm    key projection (precomputed in wrapper)
    wqt_ref   : (KP, C)    mm     Wq^T, zero-padded K -> KP
    bq_ref    : (KP, 1)    fp32   zero-padded
    gamma_ref : (1,)       fp32   SMEM scalar
    o_ref     : (1, C, TQ)
    """
    x = x_ref[0]                                                     # (C, TQ) fp32

    # q^T = Wq^T @ x + bq  -> (KP, TQ); fp32 accumulate.  Padded KP rows stay 0.
    q = jnp.dot(wqt_ref[...], x.astype(matmul_dtype),
                preferred_element_type=jnp.float32) + bq_ref[...]

    # energy^T = k @ q^T -> (Np, TQ); padded K lanes contribute exactly 0.
    energy_t = jnp.dot(k_ref[0], q.astype(matmul_dtype),
                       preferred_element_type=jnp.float32)

    # Softmax numerator over the key axis (axis 0, the sublane axis), fp32.
    m = jnp.max(energy_t, axis=0, keepdims=True)                     # (1, TQ)
    p = jnp.exp(energy_t - m)                                        # (Np, TQ)
    s = jnp.sum(p, axis=0, keepdims=True)                            # (1, TQ)

    # Unnormalized output: xp @ p -> (C, TQ).  Normalization deferred below.
    out_un = jnp.dot(xp_ref[0], p.astype(matmul_dtype),
                     preferred_element_type=jnp.float32)

    # Deferred softmax normalize (C*TQ mults instead of Np*TQ), gamma folded in.
    inv = pl.reciprocal(s, approx=approx_recip)                      # (1, TQ)
    o_ref[0] = (x + out_un * (gamma_ref[0] * inv)).astype(o_ref.dtype)


def _tpu_vmem_capacity_bytes():
    """Per-core VMEM capacity; conservative (v7x-sized) fallback."""
    try:
        cap = int(getattr(pltpu.get_tpu_info(), "vmem_capacity_bytes", 0) or 0)
        if cap > 0:
            return cap
    except Exception:
        pass
    return 64 * 1024 * 1024


def _choose_tq(HW, C, Np, KP, budget_bytes, mm_bytes):
    """Pick the query-token tile TQ and the (possibly padded) token count.

    Live-set estimate per grid step (double-buffered pipeline inputs/outputs,
    fp32 intermediates, matmul-dtype casts, Mosaic internal scratch headroom).
    """
    def need(tq):
        return (
            2 * C * tq * 4                      # x tile, double-buffered fp32
            + 2 * C * tq * 4                    # out tile, double-buffered fp32
            + 2 * C * Np * mm_bytes             # xp (value), double-buffered
            + 2 * Np * KP * mm_bytes            # key projection, double-buffered
            + 2 * (KP * C * mm_bytes + KP * 4)  # Wq^T + bq
            + Np * tq * (4 + 4 + mm_bytes)      # energy + exp(p) fp32 + p cast
            + KP * tq * (4 + mm_bytes)          # q fp32 + q cast
            + C * tq * 4                        # unnormalized out fp32
            + (4 << 20)                         # Mosaic internal scratch headroom
        )

    if HW <= 256:
        return HW, HW                           # single whole tile, no padding

    # Prefer multiples of 256 (full 256x256 MXU on v6e/v7x); 128 = last resort.
    candidates = [4096, 2048, 1024, 512, 256, 128]
    fitting = [t for t in candidates if t <= HW and need(t) <= budget_bytes]
    if not fitting:
        fitting = [128]                         # may spill; best we can do
    for tq in fitting:                          # prefer a divisor -> no padding
        if HW % tq == 0:
            return tq, HW
    tq = fitting[0]
    return tq, ((HW + tq - 1) // tq) * tq       # pad; extra columns discarded


def pam_module_forward(x, wq, bq, wk, bk, gamma, *, matmul_dtype=jnp.bfloat16,
                       approx_recip=True):
    """x: (B, C, H, W) float32 (NCHW, like the PyTorch module).

    wq, wk: (C, K) (== PyTorch Conv2d weight (K, C, 1, 1) transposed);
    bq, bk: (1, K); gamma: (1,).
    """
    B, C, H, W = x.shape
    K = wq.shape[1]
    assert H % 2 == 0 and W % 2 == 0, "2x2 max-pool needs even H, W"
    hp, wp = H // 2, W // 2
    HW, Np = H * W, hp * wp

    mm = matmul_dtype
    mm_bytes = jnp.dtype(mm).itemsize

    # --- pad K only to the sublane pack of the matmul dtype (zeros -> exact) ---
    pack = 8 * (4 // mm_bytes)                  # 8 for fp32, 16 for bf16
    KP = ((K + pack - 1) // pack) * pack
    wqt_p = jnp.zeros((KP, C), mm).at[:K, :].set(wq.T.astype(mm))     # (KP, C)
    bq_p = jnp.zeros((KP, 1), jnp.float32).at[:K, 0].set(
        bq.reshape(-1).astype(jnp.float32))

    # --- plain-JAX glue: MaxPool2d(2), key projection, layout / dtype prep ---
    xp = jnp.max(x.reshape(B, C, hp, 2, wp, 2), axis=(3, 5))          # (B,C,hp,wp)
    xp_cm = xp.reshape(B, C, Np).astype(mm)                           # value operand
    xp_tm = jnp.transpose(xp, (0, 2, 3, 1)).reshape(B, Np, C)         # small (pooled)
    k_proj = (jnp.einsum('bnc,ck->bnk', xp_tm, wk.astype(jnp.float32))
              + bk.reshape(1, 1, K).astype(jnp.float32))              # (B, Np, K) fp32
    k_p = jnp.zeros((B, Np, KP), mm).at[:, :, :K].set(k_proj.astype(mm))

    # --- generation-aware tile size + scoped VMEM limit ---
    cap = _tpu_vmem_capacity_bytes()
    tile_budget = int(cap * 0.55)               # ~35 MiB on v7x, ~70 MiB on v5e/v6e
    vmem_limit = int(cap * 0.75)                # ~48 MiB on v7x, ~96 MiB on v5e/v6e
    TQ, HWp = _choose_tq(HW, C, Np, KP, tile_budget, mm_bytes)
    n_tiles = HWp // TQ

    x_cm = x.reshape(B, C, HW)                                        # no transpose
    if HWp != HW:
        x_cm = jnp.pad(x_cm, ((0, 0), (0, 0), (0, HWp - HW)))

    cost = pl.CostEstimate(
        flops=int(2 * B * HWp * (C * KP + KP * Np + C * Np)),
        transcendentals=int(B * HWp * Np),
        bytes_accessed=int(4 * 2 * B * C * HWp
                           + mm_bytes * B * (C * Np + Np * KP)
                           + mm_bytes * (KP * C) + 4 * KP),
    )

    kernel = functools.partial(pam_kernel, matmul_dtype=mm,
                               approx_recip=approx_recip)

    out_cm = pl.pallas_call(
        kernel,
        out_shape=jax.ShapeDtypeStruct((B, C, HWp), x.dtype),
        grid_spec=pltpu.PrefetchScalarGridSpec(
            num_scalar_prefetch=0,
            grid=(B, n_tiles),
            in_specs=[
                pl.BlockSpec((1, C, TQ), lambda b, t: (b, 0, t)),     # x tile
                pl.BlockSpec((1, C, Np), lambda b, t: (b, 0, 0)),     # xp (value)
                pl.BlockSpec((1, Np, KP), lambda b, t: (b, 0, 0)),    # k projection
                pl.BlockSpec((KP, C), lambda b, t: (0, 0)),           # Wq^T
                pl.BlockSpec((KP, 1), lambda b, t: (0, 0)),           # bq
                pl.BlockSpec(memory_space=pltpu.MemorySpace.SMEM),    # gamma (1,)
            ],
            out_specs=pl.BlockSpec((1, C, TQ), lambda b, t: (b, 0, t)),
        ),
        compiler_params=pltpu.CompilerParams(
            dimension_semantics=("parallel", "parallel"),   # fully independent tiles
            vmem_limit_bytes=vmem_limit,
        ),
        cost_estimate=cost,
    )(x_cm, xp_cm, k_p, wqt_p, bq_p, gamma)

    if HWp != HW:
        out_cm = out_cm[:, :, :HW]
    return out_cm.reshape(B, C, H, W)


def pam_module_reference(x, wq, bq, wk, bk, gamma):
    """Pure-JAX reference mirroring the PyTorch forward."""
    B, C, H, W = x.shape
    hp, wp = H // 2, W // 2
    xp = jnp.max(x.reshape(B, C, hp, 2, wp, 2), axis=(3, 5))
    q = jnp.einsum('bchw,ck->bhwk', x, wq) + bq[0]                    # (B,H,W,K)
    k = jnp.einsum('bchw,ck->bhwk', xp, wk) + bk[0]                   # (B,hp,wp,K)
    q = q.reshape(B, H * W, -1)
    k = k.reshape(B, hp * wp, -1)
    energy = jnp.einsum('bnk,bmk->bnm', q, k)                         # (B, HW, Np)
    attn = jax.nn.softmax(energy, axis=-1)
    pv = xp.reshape(B, C, hp * wp)                                    # (B, C, Np)
    out = jnp.einsum('bcm,bnm->bcn', pv, attn).reshape(B, C, H, W)
    return x + gamma[0] * out


if __name__ == "__main__":
    B, C, H, W = 2, 4, 16, 16
    key_dim = 8

    key = jax.random.PRNGKey(0)
    kx, kwq, kbq, kwk, kbk = jax.random.split(key, 5)

    x = jax.random.normal(kx, (B, C, H, W), dtype=jnp.float32)
    # conv weights: PyTorch Conv2d weight is (K, C, 1, 1); stored here as (C, K)
    wq = jax.random.normal(kwq, (C, key_dim), dtype=jnp.float32) * 0.1
    bq = jax.random.normal(kbq, (1, key_dim), dtype=jnp.float32) * 0.1
    wk = jax.random.normal(kwk, (C, key_dim), dtype=jnp.float32) * 0.1
    bk = jax.random.normal(kbk, (1, key_dim), dtype=jnp.float32) * 0.1
    # gamma is nn.Parameter(torch.zeros(1)) in __init__; nonzero so the
    # attention path actually contributes to the check.
    gamma = jnp.array([0.5], dtype=jnp.float32)

    ref = pam_module_reference(x, wq, bq, wk, bk, gamma)

    # fp32-matmul, exact-reciprocal path: tight correctness check.
    out_fp32 = jax.block_until_ready(
        pam_module_forward(x, wq, bq, wk, bk, gamma,
                           matmul_dtype=jnp.float32, approx_recip=False))
    assert out_fp32.shape == (B, C, H, W)
    assert jnp.allclose(out_fp32, ref, atol=2e-3, rtol=2e-3), "fp32 path mismatch"

    # bf16-matmul path (default; MXU-friendly on v5e/v6e/v7x): looser check.
    out_bf16 = jax.block_until_ready(
        pam_module_forward(x, wq, bq, wk, bk, gamma))
    assert out_bf16.shape == (B, C, H, W)
    assert jnp.allclose(out_bf16, ref, atol=1e-1, rtol=1e-1), "bf16 path mismatch"

    print("KERNEL_OK")
</pallas_src>

<mosaic_0001>
module attributes {stable_mosaic.version = 11 : i64} {
  func.func @pam_kernel(%arg0: i32, %arg1: i32, %arg2: memref<1x4x256xf32, #tpu.memory_space<vmem>>, %arg3: memref<1x4x64xf32, #tpu.memory_space<vmem>>, %arg4: memref<1x64x8xf32, #tpu.memory_space<vmem>>, %arg5: memref<8x4xf32, #tpu.memory_space<vmem>>, %arg6: memref<8x1xf32, #tpu.memory_space<vmem>>, %arg7: memref<1xf32, #tpu.memory_space<smem>>, %arg8: memref<1x4x256xf32, #tpu.memory_space<vmem>>) attributes {dimension_semantics = [#tpu.dimension_semantics<parallel>, #tpu.dimension_semantics<parallel>], iteration_bounds = array<i64: 2, 1>, scalar_prefetch = 0 : i64, scratch_operands = 0 : i64, tpu.core_type = #tpu.core_type<tc>, window_params = [{transform_indices = @transform_0, window_bounds = array<i64: 1, 4, 256>}, {transform_indices = @transform_1, window_bounds = array<i64: 1, 4, 64>}, {transform_indices = @transform_2, window_bounds = array<i64: 1, 64, 8>}, {pipeline_mode = #tpu.pipeline_mode<synchronous>, transform_indices = @transform_3, window_bounds = array<i64: 8, 4>}, {pipeline_mode = #tpu.pipeline_mode<synchronous>, transform_indices = @transform_4, window_bounds = array<i64: 8, 1>}, {transform_indices = @transform_5, window_bounds = array<i64: 1>}, {transform_indices = @transform_6, window_bounds = array<i64: 1, 4, 256>}]} {
    %c0 = arith.constant 0 : index
    %c0_0 = arith.constant 0 : index
    %c0_1 = arith.constant 0 : index
    %0 = vector.load %arg2[%c0, %c0_0, %c0_1] : memref<1x4x256xf32, #tpu.memory_space<vmem>>, vector<1x4x256xf32>
    %1 = vector.shape_cast %0 : vector<1x4x256xf32> to vector<4x256xf32>
    %c0_2 = arith.constant 0 : index
    %c0_3 = arith.constant 0 : index
    %2 = vector.load %arg5[%c0_2, %c0_3] : memref<8x4xf32, #tpu.memory_space<vmem>>, vector<8x4xf32>
    %cst = arith.constant dense<0.000000e+00> : vector<8x256xf32>
    %3 = tpu.matmul %2, %1, %cst {dimension_numbers = #tpu.dot_dimension_numbers<[1], [0], [0], [1], [0, 0, 1, 1], [], []>} : vector<8x4xf32>, vector<4x256xf32>, vector<8x256xf32> -> vector<8x256xf32>
    %c0_4 = arith.constant 0 : index
    %c0_5 = arith.constant 0 : index
    %4 = vector.load %arg6[%c0_4, %c0_5] : memref<8x1xf32, #tpu.memory_space<vmem>>, vector<8x1xf32>
    %5 = vector.broadcast %4 : vector<8x1xf32> to vector<8x256xf32>
    %6 = arith.addf %3, %5 : vector<8x256xf32>
    %c0_6 = arith.constant 0 : index
    %c0_7 = arith.constant 0 : index
    %c0_8 = arith.constant 0 : index
    %7 = vector.load %arg4[%c0_6, %c0_7, %c0_8] : memref<1x64x8xf32, #tpu.memory_space<vmem>>, vector<1x64x8xf32>
    %8 = vector.shape_cast %7 : vector<1x64x8xf32> to vector<64x8xf32>
    %cst_9 = arith.constant dense<0.000000e+00> : vector<64x256xf32>
    %9 = tpu.matmul %8, %6, %cst_9 {dimension_numbers = #tpu.dot_dimension_numbers<[1], [0], [0], [1], [0, 0, 1, 1], [], []>} : vector<64x8xf32>, vector<8x256xf32>, vector<64x256xf32> -> vector<64x256xf32>
    %cst_10 = arith.constant dense<0xFF800000> : vector<256xf32>
    %10 = vector.multi_reduction <maximumf>, %9, %cst_10 [0] : vector<64x256xf32> to vector<256xf32>
    %11 = vector.shape_cast %10 : vector<256xf32> to vector<1x256xf32>
    %12 = vector.broadcast %11 : vector<1x256xf32> to vector<64x256xf32>
    %13 = arith.subf %9, %12 : vector<64x256xf32>
    %14 = math.exp %13 : vector<64x256xf32>
    %cst_11 = arith.constant dense<0.000000e+00> : vector<256xf32>
    %15 = vector.multi_reduction <add>, %14, %cst_11 [0] : vector<64x256xf32> to vector<256xf32>
    %16 = vector.shape_cast %15 : vector<256xf32> to vector<1x256xf32>
    %c0_12 = arith.constant 0 : index
    %c0_13 = arith.constant 0 : index
    %c0_14 = arith.constant 0 : index
    %17 = vector.load %arg3[%c0_12, %c0_13, %c0_14] : memref<1x4x64xf32, #tpu.memory_space<vmem>>, vector<1x4x64xf32>
    %18 = vector.shape_cast %17 : vector<1x4x64xf32> to vector<4x64xf32>
    %cst_15 = arith.constant dense<0.000000e+00> : vector<4x256xf32>
    %19 = tpu.matmul %18, %14, %cst_15 {dimension_numbers = #tpu.dot_dimension_numbers<[1], [0], [0], [1], [0, 0, 1, 1], [], []>} : vector<4x64xf32>, vector<64x256xf32>, vector<4x256xf32> -> vector<4x256xf32>
    %20 = tpu.reciprocal %16 : vector<1x256xf32> -> vector<1x256xf32>
    %c0_16 = arith.constant 0 : index
    %21 = memref.load %arg7[%c0_16] : memref<1xf32, #tpu.memory_space<smem>>
    %22 = vector.broadcast %21 : f32 to vector<1x256xf32>
    %23 = arith.mulf %22, %20 : vector<1x256xf32>
    %24 = vector.broadcast %23 : vector<1x256xf32> to vector<4x256xf32>
    %25 = arith.mulf %19, %24 : vector<4x256xf32>
    %26 = arith.addf %1, %25 : vector<4x256xf32>
    %c0_17 = arith.constant 0 : index
    %c0_18 = arith.constant 0 : index
    %c0_19 = arith.constant 0 : index
    %27 = vector.load %arg8[%c0_17, %c0_18, %c0_19] : memref<1x4x256xf32, #tpu.memory_space<vmem>>, vector<1x4x256xf32>
    %28 = vector.shape_cast %27 : vector<1x4x256xf32> to vector<4x256xf32>
    %29 = vector.shape_cast %26 : vector<4x256xf32> to vector<1x4x256xf32>
    tpu.vector_store %arg8[%c0_17, %c0_18, %c0_19], %29 {strides = array<i32>} : memref<1x4x256xf32, #tpu.memory_space<vmem>>, vector<1x4x256xf32>,
    return
  }
  func.func @transform_0(%arg0: i32, %arg1: i32) -> (i32, i32, i32) {
    %c0_i32 = arith.constant 0 : i32
    %c0_i32_0 = arith.constant 0 : i32
    return %arg0, %c0_i32, %arg1 : i32, i32, i32
  }
  func.func @transform_1(%arg0: i32, %arg1: i32) -> (i32, i32, i32) {
    %c0_i32 = arith.constant 0 : i32
    %c0_i32_0 = arith.constant 0 : i32
    %c0_i32_1 = arith.constant 0 : i32
    return %arg0, %c0_i32, %c0_i32_0 : i32, i32, i32
  }
  func.func @transform_2(%arg0: i32, %arg1: i32) -> (i32, i32, i32) {
    %c0_i32 = arith.constant 0 : i32
    %c0_i32_0 = arith.constant 0 : i32
    %c0_i32_1 = arith.constant 0 : i32
    return %arg0, %c0_i32, %c0_i32_0 : i32, i32, i32
  }
  func.func @transform_3(%arg0: i32, %arg1: i32) -> (i32, i32) {
    %c0_i32 = arith.constant 0 : i32
    %c0_i32_0 = arith.constant 0 : i32
    %c0_i32_1 = arith.constant 0 : i32
    return %c0_i32, %c0_i32_0 : i32, i32
  }
  func.func @transform_4(%arg0: i32, %arg1: i32) -> (i32, i32) {
    %c0_i32 = arith.constant 0 : i32
    %c0_i32_0 = arith.constant 0 : i32
    %c0_i32_1 = arith.constant 0 : i32
    return %c0_i32, %c0_i32_0 : i32, i32
  }
  func.func @transform_5(%arg0: i32, %arg1: i32) -> i32 {
    %c0_i32 = arith.constant 0 : i32
    %c0_i32_0 = arith.constant 0 : i32
    return %c0_i32 : i32
  }
  func.func @transform_6(%arg0: i32, %arg1: i32) -> (i32, i32, i32) {
    %c0_i32 = arith.constant 0 : i32
    %c0_i32_0 = arith.constant 0 : i32
    return %arg0, %c0_i32, %arg1 : i32, i32, i32
  }
}

</mosaic_0001>

<bundles_post_ra>
// kernel: tpu_custom_call.1
= control target key start
LH: loop header
LB: loop body
LE: loop exit
PB: predicated region body
PF: predicated region fallthrough
CT: control target
= control target key end

     0   :  { %s1292_s0 = inlined_call_operand.vmem [shape: f32[2,4,256], index: 0, kind: input, shape index: {}]   ;;  %s1293_s1 = inlined_call_operand.vmem [shape: f32[2,4,64], index: 1, kind: input, shape index: {}]   ;;  %s1294_s2 = inlined_call_operand.vmem [shape: f32[2,64,8], index: 2, kind: input, shape index: {}]   ;;  %s1295_s3 = inlined_call_operand.vmem [shape: f32[8,4], index: 3, kind: input, shape index: {}]   ;;  %s1296_s4 = inlined_call_operand.vmem [shape: f32[8,1], index: 4, kind: input, shape index: {}]   ;;  %s1297_s5 = inlined_call_operand.<no memory space> [shape: f32[1], index: 5, kind: input, shape index: {}]   ;;  %s1298_s6 = inlined_call_operand.hbm [shape: f32[2,4,256], index: 6, kind: output, shape index: {}]  }
   0x1   :  { %11 = sst [smem:[#allocation2]] %s1297_s5 }
   0x2   :  { %12 = vsyncpa [#allocation4], 0 }
   0x3   :  { %14 = vsyncpa [#allocation4 + $0x1], 0  ;;  %s1125_s23 = smov 0   ;;  %s1127_s24 = smov 0  }
   0x4   :  { %s1129_s25 = smov 0   ;;  %s1131_s26 = smov 0  }
   0x5   :  { %s1133_s27 = smov 0   ;;  %s1135_s28 = smov 0  }
   0x6 LB: > { %s862_s5 = sadd.s32 4294967295, %s1082_s28   ;;  %s863_s29 = sadd.s32 4294967294, %s1082_s28   ;;  %s1082_s28 = sphi %s1135_s28, %s20_s28   ;;  %s1078_s27 = sphi %s1133_s27, %s1305_s27   ;;  %s1074_s26 = sphi %s1131_s26, %s1304_s26   ;;  %s1070_s25 = sphi %s1129_s25, %s1303_s25   ;;  %s1066_s24 = sphi %s1127_s24, %s1302_s24   ;;  %s1062_s23 = sphi %s1125_s23, %s1301_s23  }
   0x7   : > { %s32_s30 = sadd.s32 1, %s1078_s27  ;;  %s184_s7 = sadd.s32 1, %s1070_s25 }
   0x8   : > { %p34_p0 = scmp.ge.s32.totalorder %s32_s30, 2  ;;  %p194_p1 = scmp.ne.s32.totalorder %s1070_s25, %s1066_s24 }
   0x9   : > { %p195_p2 = scmp.eq.s32.totalorder %s862_s5, 1  ;;  %p200_p3 = scmp.ne.s32.totalorder %s1066_s24, %s1062_s23 }
   0xa   : > { %s1307_s30 = smov (%p34_p0, %s32_s30), 0  ;;  %p201_p5 = scmp.eq.s32.totalorder %s863_s29, 1 }
   0xb   : > { %p1165_p4 = por %p195_p2, %p194_p1  ;;  %s179_s9 = ssub.s32 %s1078_s27, %s1307_s30 }
   0xc   : > { %p866_p6 = scmp.ge.s32.totalorder %s1082_s28, 1  ;;  %p182_p7 = scmp.eq.s32.totalorder %s179_s9, 0 }
   0xd   : > { %p1172_p8 = por %p201_p5, %p200_p3  ;;  %p256_p9 = scmp.lt.s32.totalorder %s1082_s28, 3 }
   0xe   : > { %s1178_s11 = scalar_select %p182_p7, %s1070_s25, %s184_s7  }
   0xf   : > { %p257_p10 = pnand %p866_p6, %p256_p9 }
  0x10   : > { %p300_p11 = scmp.lt.s32.totalorder (!%p257_p10), %s1074_s26, 1  ;;  %v1084_v0 = vmov (!%p257_p10), 0.0   ;;  %v1085_v1 = vmov (!%p257_p10), 0   ;;  %v321_v2 = vld [vmem:[%s1296_s4] sm:$0xff] (!%p257_p10)  ;;  %vm333_vm0 = vcmask (!%p257_p10), 1043456   ;;  %vm329_vm1 = vcmask (!%p257_p10), 31744  }
  0x11   : > { %260 = sbr.rel (%p257_p10) target bundleno = 781 (0x30d), region = 44  ;;  %402 = vmatprep.mubr.f32.mxu0 (!%p257_p10), %v1084_v0  ;;  %966 = vset.pattern.permute.xlu0 (!%p257_p10), %v1085_v1  ;;  %v320_v5 = vld [vmem:[%s1295_s3] sm:$0xff] (!%p257_p10)  ;;  %vm417_vm2 = vcmask (!%p257_p10), 64512   ;;  %vm656_vm3 = vcmask (!%p257_p10), 523264   ;;  %s892_s17 = sshll.u32 (!%p257_p10), %s1074_s26, 7 }
  0x12   : > { %324 = vperm.xlu0 (!%p257_p10), %966, %v321_v2   ;;  %506 = vmatprep.mubr.f32.mxu1 (!%p257_p10), %v1084_v0  ;;  %s1245_s22 = scalar_lea.hbm (!%p257_p10), %s1298_s6, %s892_s17 }
  0x18   : > { %s1185_s14 = scalar_select %p300_p11, %s1074_s26, 1 }
  0x19   : > { %s1086_s26 = smov [#allocation3]  }
  0x1a   : > { %s890_s15 = sshll.u32 %s1185_s14, 3  ;;  %s891_s21 = sshll.u32 %s1185_s14, 6 }
  0x1b   : > { %s307_s18 = scalar_lea.vmem %s1292_s0, %s890_s15  ;;  %s317_s29 = scalar_lea.vmem %s1294_s2, %s891_s21 }
  0x1c   : > { %v1191_v3 = vld [vmem:[%s307_s18] sm:$0xff]  ;;  %v410_v12 = vld [vmem:[%s317_s29 + $0x8] sm:$0xff]  ;;  %v411_v13 = vld [vmem:[%s317_s29 + $0x10] sm:$0xff]  ;;  %s870_s7 = sshll.u32 %s1185_s14, 2  ;;  %s733_s14 = sld [smem:[#allocation2]] }
  0x1d   : > { %v328_v4 = vcombine.high %v1191_v3, %v1191_v3  ;;  %v409_v11 = vld [vmem:[%s317_s29] sm:$0xff]  ;;  %v412_v14 = vld [vmem:[%s317_s29 + $0x18] sm:$0xff]  ;;  %v414_v16 = vld [vmem:[%s317_s29 + $0x28] sm:$0xff]  ;;  %s312_s13 = scalar_lea.vmem %s1293_s1, %s870_s7  ;;  %s296_s15 = sand.u32 1, %s1066_s24  }
  0x1e   : > { %v413_v15 = vld [vmem:[%s317_s29 + $0x20] sm:$0xff]  ;;  %v415_v17 = vld [vmem:[%s317_s29 + $0x30] sm:$0xff]  ;;  %v416_v18 = vld [vmem:[%s317_s29 + $0x38] sm:$0xff]  ;;  %s867_s16 = sshll.u32 %s296_s15, 3  ;;  %s746_s5 = scalar_lea.sflag [#allocation4], %s296_s15 }
  0x1f   : > { %873 = vmatprep.subr.msk.mxu0 %vm333_vm0, %v328_v4  ;;  %s298_s18 = scalar_lea.vmem [#allocation3], %s867_s16  ;;  %s1008_s7 = sshll.u32 %s1086_s26, 4  ;;  %s1009_s7 = int_to_ptr.vmem [resolvable:$false] %s1008_s7 }
  0x20   : > { %874 = vmatpush1.msk.msra.mxu0 %vm333_vm0, %v1191_v3  ;;  %s762_s19 = sshll.u32 %s298_s18, 4  ;;  %s1010_s9 = scalar_lea.vmem %s1009_s7, 256  ;;  %s1247_s19 = int_to_ptr.vmem [resolvable:$true] %s762_s19 }
  0x21   : > { %875 = vmatmul.mubr.msk.f32.vlgmr.msra.gmra.mrb[0].mxu0 %vm329_vm1, %v320_v5  ;;  %s1004_s29 = scalar_lea.vmem %s1247_s19, 128  ;;  %p1011_p1 = scmp.lt.s32.totalorder %s1247_s19, %s1009_s7 }
  0x22   : > { %724 = vmatprep.mubr.f32.mxu0 %v1084_v0  ;;  %p1005_p12 = scmp.ne.s32.totalorder %s1247_s19, %s1004_s29  ;;  %p1012_p2 = scmp.lt.s32.totalorder %s1010_s9, %s1004_s29 }
  0x24   : > { %p1006_p13 = pnand %p1005_p12, %p1165_p4  ;;  %p1013_p3 = por %p1012_p2, %p1011_p1 }
  0x26   : > { %p1007_p0 = pneg %p1006_p13 }
  0x28   : > { %p1014_p5 = pnand %p1013_p3, %p1007_p0 }
  0x91   : > { %v325_v6 = vpop.permute.xlu0 %324 }
  0xf4   : > { %v404_v7 = vpop.f32.mrb[0].mxu0 }
  0xf5   : > { %v406_v8 = vpop.f32.mrb[1].mxu0  ;;  %v405_v10 = vadd.f32 %v404_v7, %v325_v6 }
  0xf6   : > { %v407_v9 = vadd.f32 %v406_v8, %v325_v6 }
  0xf8   : > { %442 = vmatprep.subr.mxu1 %v407_v9 }
  0xf9   : > { %443 = vmatpush1.msra.mxu1 %v405_v10 }
  0xfa   : > { %876 = vmatmul.mubr.msk.f32.vlgmr.msra.gmra.mrb[0].mxu1 %vm417_vm2, %v409_v11 }
  0xfb   : > { %512 = vmatprep.mubr.f32.mxu1 %v1084_v0 }
  0xfe   : > { %877 = vmatmul.mubr.msk.f32.gmra.mrb[2].mxu1 %vm417_vm2, %v410_v12 }
  0xff   : > { %518 = vmatprep.mubr.f32.mxu1 %v1084_v0 }
 0x102   : > { %878 = vmatmul.mubr.msk.f32.gmra.mrb[4].mxu1 %vm417_vm2, %v411_v13 }
 0x103   : > { %524 = vmatprep.mubr.f32.mxu1 %v1084_v0 }
 0x106   : > { %879 = vmatmul.mubr.msk.f32.gmra.mrb[6].mxu1 %vm417_vm2, %v412_v14 }
 0x107   : > { %530 = vmatprep.mubr.f32.mxu1 %v1084_v0 }
 0x10a   : > { %880 = vmatmul.mubr.msk.f32.gmra.mrb[8].mxu1 %vm417_vm2, %v413_v15 }
 0x10b   : > { %536 = vmatprep.mubr.f32.mxu1 %v1084_v0 }
 0x10e   : > { %881 = vmatmul.mubr.msk.f32.gmra.mrb[10].mxu1 %vm417_vm2, %v414_v16 }
 0x10f   : > { %542 = vmatprep.mubr.f32.mxu1 %v1084_v0 }
 0x112   : > { %882 = vmatmul.mubr.msk.f32.gmra.mrb[12].mxu1 %vm417_vm2, %v415_v17 }
 0x113   : > { %548 = vmatprep.mubr.f32.mxu1 %v1084_v0 }
 0x116   : > { %883 = vmatmul.mubr.msk.f32.gmra.mrb[14].mxu1 %vm417_vm2, %v416_v18 }
 0x1cd   : > { %v508_v19 = vpop.f32.mrb[0].mxu1 }
 0x1ce   : > { %v1211_v20 = vpop.f32.mrb[1].mxu1 }
 0x1d1   : > { %v514_v21 = vpop.f32.mrb[2].mxu1 }
 0x1d2   : > { %v1213_v22 = vpop.f32.mrb[3].mxu1 }
 0x1d5   : > { %v520_v23 = vpop.f32.mrb[4].mxu1 }
 0x1d6   : > { %v555_v24 = vmax.f32 %v508_v19, %v520_v23  ;;  %v1215_v25 = vpop.f32.mrb[5].mxu1 }
 0x1d7   : > { %v568_v26 = vmax.f32 %v1211_v20, %v1215_v25 }
 0x1d9   : > { %v526_v27 = vpop.f32.mrb[6].mxu1 }
 0x1da   : > { %v556_v28 = vmax.f32 %v514_v21, %v526_v27  ;;  %v1219_v29 = vpop.f32.mrb[7].mxu1 }
 0x1db   : > { %v569_v30 = vmax.f32 %v1213_v22, %v1219_v29 }
 0x1dd   : > { %v532_v31 = vpop.f32.mrb[8].mxu1 }
 0x1de   : > { %v557_v32 = vmax.f32 %v555_v24, %v532_v31  ;;  %v1223_v33 = vpop.f32.mrb[9].mxu1 }
 0x1df   : > { %v570_v34 = vmax.f32 %v568_v26, %v1223_v33 }
 0x1e1   : > { %v538_v35 = vpop.f32.mrb[10].mxu1 }
 0x1e2   : > { %v558_v36 = vmax.f32 %v556_v28, %v538_v35  ;;  %v1226_v37 = vpop.f32.mrb[11].mxu1 }
 0x1e3   : > { %v571_v38 = vmax.f32 %v569_v30, %v1226_v37 }
 0x1e5   : > { %v544_v39 = vpop.f32.mrb[12].mxu1 }
 0x1e6   : > { %v559_v40 = vmax.f32 %v557_v32, %v544_v39  ;;  %v546_v41 = vpop.f32.mrb[13].mxu1 }
 0x1e7   : > { %v572_v42 = vmax.f32 %v570_v34, %v546_v41 }
 0x1e9   : > { %v550_v43 = vpop.f32.mrb[14].mxu1 }
 0x1ea   : > { %v560_v44 = vmax.f32 %v558_v36, %v550_v43  ;;  %v552_v45 = vpop.f32.mrb[15].mxu1 }
 0x1eb   : > { %v573_v46 = vmax.f32 %v571_v38, %v552_v45 }
 0x1ec   : > { %v561_v47 = vmax.f32 %v559_v40, %v560_v44 }
 0x1ed   : > { %v574_v48 = vmax.f32 %v572_v42, %v573_v46 }
 0x1ee   : > { %v562_v49 = vrot.slane %v561_v47, 4 }
 0x1ef   : > { %v575_v50 = vrot.slane %v574_v48, 4 }
 0x1f0   : > { %v563_v51 = vmax.f32 %v561_v47, %v562_v49 }
 0x1f1   : > { %v576_v52 = vmax.f32 %v574_v48, %v575_v50 }
 0x1f2   : > { %v564_v53 = vrot.slane %v563_v51, 2 }
 0x1f3   : > { %v577_v54 = vrot.slane %v576_v52, 2 }
 0x1f4   : > { %v565_v55 = vmax.f32 %v563_v51, %v564_v53 }
 0x1f5   : > { %v578_v56 = vmax.f32 %v576_v52, %v577_v54 }
 0x1f6   : > { %v566_v57 = vrot.slane %v565_v55, 1 }
 0x1f7   : > { %v579_v58 = vrot.slane %v578_v56, 1 }
 0x1f8   : > { %v567_v59 = vmax.f32 %v565_v55, %v566_v57 }
 0x1f9   : > { %v580_v60 = vmax.f32 %v578_v56, %v579_v58 }
 0x1fa   : > { %v581_v61 = vsub.f32 %v508_v19, %v567_v59  ;;  %v583_v62 = vsub.f32 %v514_v21, %v567_v59  ;;  %v585_v63 = vsub.f32 %v520_v23, %v567_v59  ;;  %v587_v0 = vsub.f32 %v526_v27, %v567_v59 }
 0x1fb   : > { %v589_v1 = vsub.f32 %v532_v31, %v567_v59  ;;  %v591_v2 = vsub.f32 %v538_v35, %v567_v59  ;;  %v593_v4 = vsub.f32 %v544_v39, %v567_v59  ;;  %v595_v5 = vsub.f32 %v550_v43, %v567_v59 }
 0x1fc   : > { %v597_v6 = vmul.f32 1.442695, %v581_v61  ;;  %v601_v7 = vmul.f32 1.442695, %v583_v62  ;;  %v605_v8 = vmul.f32 1.442695, %v585_v63  ;;  %v582_v9 = vsub.f32 %v1211_v20, %v580_v60 }
 0x1fd   : > { %v609_v10 = vmul.f32 1.442695, %v587_v0  ;;  %v584_v11 = vsub.f32 %v1213_v22, %v580_v60  ;;  %v613_v12 = vmul.f32 1.442695, %v589_v1  ;;  %v617_v13 = vmul.f32 1.442695, %v591_v2 }
 0x1fe   : > { %968 = vpow2.f32 %v597_v6  ;;  %v586_v14 = vsub.f32 %v1215_v25, %v580_v60  ;;  %v588_v15 = vsub.f32 %v1219_v29, %v580_v60  ;;  %v590_v16 = vsub.f32 %v1223_v33, %v580_v60 }
 0x1ff   : > { %970 = vpow2.f32 %v601_v7  ;;  %v592_v17 = vsub.f32 %v1226_v37, %v580_v60  ;;  %v621_v18 = vmul.f32 1.442695, %v593_v4  ;;  %v594_v19 = vsub.f32 %v546_v41, %v580_v60 }
 0x200   : > { %972 = vpow2.f32 %v605_v8  ;;  %v596_v21 = vsub.f32 %v552_v45, %v580_v60  ;;  %v625_v20 = vmul.f32 1.442695, %v595_v5  ;;  %v599_v22 = vmul.f32 1.442695, %v582_v9  ;;  %v655_v5 = vld [vmem:[%s312_s13] sm:$0xf] }
 0x201   : > { %974 = vpow2.f32 %v609_v10  ;;  %v603_v23 = vmul.f32 1.442695, %v584_v11  ;;  %v607_v24 = vmul.f32 1.442695, %v586_v14  ;;  %v611_v25 = vmul.f32 1.442695, %v588_v15 }
 0x202   : > { %976 = vpow2.f32 %v613_v12  ;;  %v615_v26 = vmul.f32 1.442695, %v590_v16  ;;  %v619_v27 = vmul.f32 1.442695, %v592_v17  ;;  %v623_v29 = vmul.f32 1.442695, %v594_v19 }
 0x203   : > { %978 = vpow2.f32 %v617_v13  ;;  %v627_v31 = vmul.f32 1.442695, %v596_v21  ;;  %v734_v19 = vstv %s733_s14 }
 0x204   : > { %980 = vpow2.f32 %v621_v18 }
 0x205   : > { %982 = vpow2.f32 %v625_v20 }
 0x206   : > { %984 = vpow2.f32 %v599_v22 }
 0x207   : > { %986 = vpow2.f32 %v603_v23 }
 0x208   : > { %v969_v28 = vpop.eup %968  ;;  %988 = vpow2.f32 %v607_v24 }
 0x209   : > { %v971_v30 = vpop.eup %970  ;;  %990 = vpow2.f32 %v611_v25 }
 0x20a   : > { %v973_v32 = vpop.eup %972  ;;  %v629_v33 = vadd.f32 %v971_v30, %v969_v28  ;;  %992 = vpow2.f32 %v615_v26  ;;  %v895_v34 = vpack.c.bf16 %v971_v30, %v969_v28 }
 0x20b   : > { %v975_v35 = vpop.eup %974  ;;  %994 = vpow2.f32 %v619_v27 }
 0x20c   : > { %v977_v36 = vpop.eup %976  ;;  %v630_v37 = vadd.f32 %v973_v32, %v629_v33  ;;  %996 = vpow2.f32 %v623_v29  ;;  %v899_v38 = vpack.c.bf16 %v975_v35, %v973_v32 }
 0x20d   : > { %v979_v39 = vpop.eup %978  ;;  %998 = vpow2.f32 %v627_v31 }
 0x20e   : > { %v981_v40 = vpop.eup %980  ;;  %v631_v41 = vadd.f32 %v975_v35, %v630_v37  ;;  %v903_v42 = vpack.c.bf16 %v979_v39, %v977_v36 }
 0x20f   : > { %v983_v43 = vpop.eup %982 }
 0x210   : > { %v985_v44 = vpop.eup %984  ;;  %v632_v45 = vadd.f32 %v977_v36, %v631_v41  ;;  %v907_v46 = vpack.c.bf16 %v983_v43, %v981_v40 }
 0x211   : > { %v987_v47 = vpop.eup %986 }
 0x212   : > { %v989_v48 = vpop.eup %988  ;;  %v633_v49 = vadd.f32 %v979_v39, %v632_v45  ;;  %v642_v50 = vadd.f32 %v987_v47, %v985_v44  ;;  %v893_v51 = vpack.c.bf16 %v987_v47, %v985_v44 }
 0x213   : > { %v991_v52 = vpop.eup %990 }
 0x214   : > { %v993_v53 = vpop.eup %992  ;;  %v634_v54 = vadd.f32 %v981_v40, %v633_v49  ;;  %v643_v55 = vadd.f32 %v989_v48, %v642_v50  ;;  %894 = vmatprep.subr.bf16.mxu0 %v893_v51  ;;  %v897_v56 = vpack.c.bf16 %v991_v52, %v989_v48 }
 0x215   : > { %v995_v57 = vpop.eup %994  ;;  %896 = vmatpush1.bf16.msra.mxu0 %v895_v34 }
 0x216   : > { %v997_v58 = vpop.eup %996  ;;  %v635_v59 = vadd.f32 %v983_v43, %v634_v54  ;;  %v644_v60 = vadd.f32 %v991_v52, %v643_v55  ;;  %898 = vmatprep.subr.bf16.mxu0 %v897_v56  ;;  %v901_v61 = vpack.c.bf16 %v995_v57, %v993_v53 }
 0x217   : > { %v999_v62 = vpop.eup %998 }
 0x218   : > { %v645_v63 = vadd.f32 %v993_v53, %v644_v60  ;;  %v905_v0 = vpack.c.bf16 %v999_v62, %v997_v58  ;;  %v636_v6 = vrot.slane %v635_v59, 4 }
 0x219   : > { %900 = vmatpush1.bf16.msra.mxu0 %v899_v38 }
 0x21a   : > { %v646_v1 = vadd.f32 %v995_v57, %v645_v63  ;;  %902 = vmatprep.subr.bf16.mxu0 %v901_v61  ;;  %v637_v8 = vadd.f32 %v636_v6, %v635_v59 }
 0x21c   : > { %v647_v2 = vadd.f32 %v997_v58, %v646_v1  ;;  %v638_v10 = vrot.slane %v637_v8, 2 }
 0x21d   : > { %904 = vmatpush1.bf16.msra.mxu0 %v903_v42 }
 0x21e   : > { %v648_v4 = vadd.f32 %v999_v62, %v647_v2  ;;  %906 = vmatprep.subr.bf16.mxu0 %v905_v0  ;;  %v639_v12 = vadd.f32 %v638_v10, %v637_v8 }
 0x220   : > { %v649_v7 = vrot.slane %v648_v4, 4  ;;  %v640_v14 = vrot.slane %v639_v12, 1 }
 0x221   : > { %908 = vmatpush1.bf16.msra.mxu0 %v907_v46 }
 0x222   : > { %v650_v9 = vadd.f32 %v649_v7, %v648_v4  ;;  %v641_v16 = vadd.f32 %v640_v14, %v639_v12 }
 0x224   : > { %884 = vmatmul.mubr.msk.f32.vlgmr.msra.gmra.mrb[2].mxu0 %vm656_vm3, %v655_v5  ;;  %v651_v11 = vrot.slane %v650_v9, 2  ;;  %1000 = vrcp.f32 %v641_v16 }
 0x226   : > { %v652_v13 = vadd.f32 %v651_v11, %v650_v9 }
 0x228   : > { %v653_v15 = vrot.slane %v652_v13, 1 }
 0x22a   : > { %v654_v17 = vadd.f32 %v653_v15, %v652_v13 }
 0x22c   : > { %1002 = vrcp.f32 %v654_v17 }
 0x22e   : > { %v1001_v18 = vpop.eup %1000 }
 0x22f   : > { %v735_v20 = vmul.f32 %v1001_v18, %v734_v19 }
 0x236   : > { %v1003_v21 = vpop.eup %1002 }
 0x237   : > { %v736_v23 = vmul.f32 %v1003_v21, %v734_v19 }
 0x2f7   : > { %v726_v22 = vpop.f32.mrb[2].mxu0 }
 0x2f8   : > { %v737_v24 = vmul.f32 %v735_v20, %v726_v22  ;;  %v728_v25 = vpop.f32.mrb[3].mxu0 }
 0x2f9   : > { %v738_v26 = vmul.f32 %v736_v23, %v728_v25 }
 0x2fb   : > { %v741_v27 = vcombine.low %v737_v24, %v738_v26 }
 0x2fd   : > { %v743_v28 = vadd.f32 %v741_v27, %v1191_v3 }
 0x2ff   : > { %744 = vst [vmem:[%s298_s18] sm:$0xff] %v743_v28 }
 0x300   : > { %1017 = shalt.err (!%p1014_p5)
}
 0x301   : > { %s1018_s12 = scalar_lea.hbm %s1245_s22, 128  ;;  %s1022_s15 = scalar_lea.hbm %s1298_s6, 256 }
 0x302   : > { %p1019_p6 = scmp.ne.s32.totalorder %s1245_s22, %s1018_s12  ;;  %p1023_p10 = scmp.lt.u32.totalorder %s1245_s22, %s1298_s6 }
 0x303   : > { %p1024_p11 = scmp.lt.u32.totalorder %s1022_s15, %s1018_s12  ;;  %p1026_p13 = scmp.lt.u32.totalorder %s1018_s12, %s1245_s22 }
 0x304   : > { %p1020_p7 = pnand %p1019_p6, %p1165_p4 }
 0x305   : > { %p1025_p12 = por %p1024_p11, %p1023_p10 }
 0x306   : > { %p1021_p9 = pneg %p1020_p7 }
 0x307   : > { %p1027_p0 = por %p1026_p13, %p1025_p12 }
 0x309   : > { %p1028_p1 = pnand %p1027_p0, %p1021_p9 }
 0x30b   : > { %1031 = shalt.err (!%p1028_p1)
}
 0x30c   : > { %909 = dma.vmem_to_hbm [thread:$0]  (%p1165_p4), %s1247_s19, 128, %s1245_s22, %s746_s5  }
 0x30d PF: > { %p915_p2 = scmp.ge.s32.totalorder %s1082_s28, 2  ;;  %s774_s18 = sand.u32 1, %s1062_s23  }
 0x30e   : > { %s775_s20 = scalar_lea.sflag [#allocation4], %s774_s18 }
 0x30f   : > { %p912_p3 = pnand %p915_p2, %p1172_p8 }
 0x311   : > { %1057 = dma.done.wait (!%p912_p3), %s775_s20, 128  }
 0x312   : > { %1059 = vsyncadd (!%p912_p3), %s775_s20, 4294967168  ;;  %s20_s28 = sadd.s32 1, %s1082_s28   ;;  %s1301_s23 = smov %s1066_s24 }
 0x313   : > { %p17_p5 = scmp.ge.s32.totalorder %s20_s28, 4   ;;  %s1302_s24 = smov %s1070_s25 }
 0x314   : > { %s1303_s25 = smov %s1178_s11  ;;  %s1304_s26 = smov %s1078_s27 }
 0x315   : > { %s1305_s27 = smov %s1307_s30  ;;  %19 = sbr.rel (!%p17_p5) target bundleno = 6 (0x6), region = 85 }
 0x31c   :  { %780 = vsyncpa [#allocation4], 1 }
 0x31d   :  { %782 = vsyncpa [#allocation4 + $0x1], 1 }

</bundles_post_ra>
